<compile_context>
chip_gen: v5e
topology: v5e:2x2
jax: 0.10.0
libtpu: 0.0.40
codegen_flags: <defaults>
</compile_context>

<pallas_src>
import functools

import numpy as np

import jax
import jax.numpy as jnp
from jax.experimental import pallas as pl
from jax.experimental.pallas import tpu as pltpu


def _elu(x):
    # F.elu with alpha=1: x if x > 0 else exp(x) - 1  (select form, no NaN risk)
    return jnp.where(x > 0, x, jnp.exp(jnp.minimum(x, 0.0)) - 1.0)


def _resconv_kernel(x_ref, wA_ref, w2_ref, b2_ref, w3_ref, b3_ref, m_ref,
                    o_ref, *, C_in, C_mid, W, dilation, use_proj):
    """One lane tile = NB whole images flattened into the lane axis.

    x_ref : (C_in+1, L)  input + trailing ones row (carries conv1/shortcut bias)
    wA_ref: (C_mid[+C_out], C_in+1)  [w1|b1] (stacked with [ws|bs] if use_proj)
    w2_ref: (C_mid, 9*C_mid)  3x3 taps unrolled along the contraction dim
    b2_ref: (C_mid, 1)    w3_ref: (C_out, C_mid)    b3_ref: (C_out, 1)
    m_ref : (9, L)        per-tap validity masks (0/1 f32), tiled per image
    o_ref : (C_out, L)    lane-dense output
    """
    L = o_ref.shape[-1]
    x_aug = x_ref[...]                                        # (C_in+1, L)

    # ---- conv1 (1x1) + projection shortcut: one fused MXU matmul ------------
    pre = jnp.dot(wA_ref[...], x_aug, preferred_element_type=jnp.float32)
    if use_proj:
        a1 = _elu(pre[:C_mid, :])          # (C_mid, L)  conv1 + ELU
        sc = pre[C_mid:, :]                # (C_out, L)  shortcut (bias folded)
    else:
        a1 = _elu(pre)                     # (C_mid, L)
        sc = x_aug[:C_in, :]               # identity shortcut (C_in == C_out)

    # ---- conv2 (3x3, dilated): 9 rolled+masked taps, ONE K=9*C_mid matmul ---
    masks = m_ref[...]                     # (9, L)
    taps = []
    for kh in range(3):
        for kw in range(3):
            k = kh * 3 + kw
            d = ((kh - 1) * W + (kw - 1)) * dilation          # flat tap offset
            if d == 0:
                taps.append(a1)            # center tap: no shift, always valid
            else:
                rolled = pltpu.roll(a1, shift=(-d) % L, axis=1)   # a1[:, j + d]
                taps.append(rolled * masks[k:k + 1, :])           # zero invalid
    stacked = jnp.concatenate(taps, axis=0)                   # (9*C_mid, L)
    a2 = _elu(jnp.dot(w2_ref[...], stacked,
                      preferred_element_type=jnp.float32) + b2_ref[...])

    # ---- conv3 (1x1, no activation) + residual + final ELU ------------------
    y = jnp.dot(w3_ref[...], a2, preferred_element_type=jnp.float32) + b3_ref[...]
    o_ref[...] = _elu(y + sc).astype(o_ref.dtype)


def resconv_pallas(x, w1, b1, w2, b2, w3, b3, ws=None, bs=None, *,
                   stride=1, dilation=1, target_lanes=4096):
    """x: (N, C_in, H, W) f32.  Weights in PyTorch Conv2d (O, I, kh, kw) layout."""
    N, C_in, H, W = x.shape
    C_mid = w1.shape[0]
    C_out = w3.shape[0]
    HW = H * W
    assert stride == 1, "TODO(synk): stride=2 (downsampling) path not implemented"
    use_proj = (C_in != C_out) or (stride == 2)

    # ---- lane tiling: NB whole images per grid step -------------------------
    # ~2-8k lanes/step amortizes grid overhead; this stays far under v7x's
    # 64 MiB VMEM (live footprint ~0.6 KB/lane).  Keep grid length even on v7x
    # when N is large so both TensorCores get work.
    NB = min(N, max(1, -(-target_lanes // HW)))   # ceil(target/HW), capped at N
    while N % NB:
        NB -= 1                                   # largest divisor of N
    if (NB * HW) % 128 != 0 and NB != N:
        NB = N                                    # lane blocks must be 128-aligned
    L = NB * HW
    G = N // NB

    f32 = jnp.float32
    # (N, C, H, W) -> (C, N*HW); append a ones row carrying the fused biases.
    x2 = jnp.transpose(x, (1, 0, 2, 3)).reshape(C_in, N * HW).astype(f32)
    x_aug = jnp.concatenate([x2, jnp.ones((1, N * HW), f32)], axis=0)

    w1m = w1.reshape(C_mid, C_in).astype(f32)
    b1m = b1.reshape(C_mid, 1).astype(f32)
    if use_proj:
        wsm = ws.reshape(C_out, C_in).astype(f32)
        bsm = bs.reshape(C_out, 1).astype(f32)
        wA = jnp.concatenate(
            [jnp.concatenate([w1m, b1m], axis=1),
             jnp.concatenate([wsm, bsm], axis=1)], axis=0)   # (C_mid+C_out, C_in+1)
    else:
        wA = jnp.concatenate([w1m, b1m], axis=1)             # (C_mid, C_in+1)

    # 3x3 weight unrolled along contraction dim: column block k = kh*3+kw
    # holds w2[:, :, kh, kw].
    w2m = jnp.transpose(w2, (0, 2, 3, 1)).reshape(C_mid, 9 * C_mid).astype(f32)
    b2m = b2.reshape(C_mid, 1).astype(f32)
    w3m = w3.reshape(C_out, C_mid).astype(f32)
    b3m = b3.reshape(C_out, 1).astype(f32)

    # Per-tap validity masks for one image (host-side, static), tiled over the
    # NB images of a lane tile.
    hh, ww = np.meshgrid(np.arange(H), np.arange(W), indexing="ij")
    mask_img = np.zeros((9, HW), np.float32)
    for kh in range(3):
        for kw in range(3):
            dh, dw = (kh - 1) * dilation, (kw - 1) * dilation
            valid = ((hh + dh >= 0) & (hh + dh < H) &
                     (ww + dw >= 0) & (ww + dw < W))
            mask_img[kh * 3 + kw] = valid.reshape(-1)
    masks = jnp.asarray(np.tile(mask_img, (1, NB)))          # (9, L)

    kernel = functools.partial(_resconv_kernel, C_in=C_in, C_mid=C_mid, W=W,
                               dilation=dilation, use_proj=use_proj)
    const = lambda g: (0, 0)

    out = pl.pallas_call(
        kernel,
        out_shape=jax.ShapeDtypeStruct((C_out, N * HW), f32),
        grid_spec=pltpu.PrefetchScalarGridSpec(
            num_scalar_prefetch=0,
            grid=(G,),
            in_specs=[
                pl.BlockSpec((C_in + 1, L), lambda g: (0, g)),   # x (+ ones row)
                pl.BlockSpec(wA.shape, const),                   # [w1;ws | b]
                pl.BlockSpec((C_mid, 9 * C_mid), const),         # w2 (unrolled)
                pl.BlockSpec((C_mid, 1), const),                 # b2
                pl.BlockSpec((C_out, C_mid), const),             # w3
                pl.BlockSpec((C_out, 1), const),                 # b3
                pl.BlockSpec((9, L), const),                     # tap masks
            ],
            out_specs=pl.BlockSpec((C_out, L), lambda g: (0, g)),
        ),
        compiler_params=pltpu.CompilerParams(
            dimension_semantics=("parallel",)),
    )(x_aug, wA, w2m, b2m, w3m, b3m, masks)

    return jnp.transpose(out.reshape(C_out, N, H, W), (1, 0, 2, 3))


def resconv_reference(x, w1, b1, w2, b2, w3, b3, ws, bs, *, stride=1, dilation=1):
    """Pure-JAX reference of the PyTorch resconv forward for validation."""
    dn = ("NCHW", "OIHW", "NCHW")
    p = dilation if dilation != 1 else 1
    c1 = jax.lax.conv_general_dilated(x, w1, (1, 1), "VALID", dimension_numbers=dn)
    c1 = _elu(c1 + b1.reshape(1, -1, 1, 1))
    c2 = jax.lax.conv_general_dilated(
        c1, w2, (stride, stride), ((p, p), (p, p)),
        rhs_dilation=(dilation, dilation), dimension_numbers=dn)
    c2 = _elu(c2 + b2.reshape(1, -1, 1, 1))
    c3 = jax.lax.conv_general_dilated(c2, w3, (1, 1), "VALID", dimension_numbers=dn)
    c3 = c3 + b3.reshape(1, -1, 1, 1)
    C_out = w3.shape[0]
    do_proj = (x.shape[1] != C_out) or (stride == 2)
    if do_proj:
        sc = jax.lax.conv_general_dilated(x, ws, (stride, stride), "VALID",
                                          dimension_numbers=dn)
        sc = sc + bs.reshape(1, -1, 1, 1)
    else:
        sc = x
    return _elu(c3 + sc)


if __name__ == "__main__":
    key = jax.random.PRNGKey(0)
    ks = jax.random.split(key, 9)

    N, C_in, H, W = 2, 4, 16, 16
    num_layers = 8                        # intermediate channels
    C_mid, C_out = num_layers, 4 * num_layers
    stride, dilation = 1, 1

    def uinit(k, shape, fan_in):
        bound = 1.0 / jnp.sqrt(fan_in)
        return jax.random.uniform(k, shape, jnp.float32, -bound, bound)

    x = jax.random.normal(ks[0], (N, C_in, H, W), dtype=jnp.float32)
    w1 = uinit(ks[1], (C_mid, C_in, 1, 1), C_in * 1 * 1)
    b1 = uinit(ks[2], (C_mid,), C_in * 1 * 1)
    w2 = uinit(ks[3], (C_mid, C_mid, 3, 3), C_mid * 3 * 3)
    b2 = uinit(ks[4], (C_mid,), C_mid * 3 * 3)
    w3 = uinit(ks[5], (C_out, C_mid, 1, 1), C_mid * 1 * 1)
    b3 = uinit(ks[6], (C_out,), C_mid * 1 * 1)
    ws = uinit(ks[7], (C_out, C_in, 1, 1), C_in * 1 * 1)
    bs = uinit(ks[8], (C_out,), C_in * 1 * 1)

    out = resconv_pallas(x, w1, b1, w2, b2, w3, b3, ws, bs,
                         stride=stride, dilation=dilation)
    out = jax.block_until_ready(out)

    ref = jax.block_until_ready(
        resconv_reference(x, w1, b1, w2, b2, w3, b3, ws, bs,
                          stride=stride, dilation=dilation))

    assert out.shape == (N, C_out, H, W), out.shape
    max_err = float(jnp.max(jnp.abs(out - ref)))
    assert jnp.allclose(out, ref, rtol=1e-5, atol=1e-4), max_err

    print("KERNEL_OK")
</pallas_src>

<mosaic_0001>
module attributes {stable_mosaic.version = 11 : i64} {
  func.func @_resconv_kernel(%arg0: i32, %arg1: memref<5x512xf32, #tpu.memory_space<vmem>>, %arg2: memref<40x5xf32, #tpu.memory_space<vmem>>, %arg3: memref<8x72xf32, #tpu.memory_space<vmem>>, %arg4: memref<8x1xf32, #tpu.memory_space<vmem>>, %arg5: memref<32x8xf32, #tpu.memory_space<vmem>>, %arg6: memref<32x1xf32, #tpu.memory_space<vmem>>, %arg7: memref<9x512xf32, #tpu.memory_space<vmem>>, %arg8: memref<32x512xf32, #tpu.memory_space<vmem>>) attributes {dimension_semantics = [#tpu.dimension_semantics<parallel>], iteration_bounds = array<i64: 1>, scalar_prefetch = 0 : i64, scratch_operands = 0 : i64, tpu.core_type = #tpu.core_type<tc>, window_params = [{transform_indices = @transform_0, window_bounds = array<i64: 5, 512>}, {pipeline_mode = #tpu.pipeline_mode<synchronous>, transform_indices = @transform_1, window_bounds = array<i64: 40, 5>}, {pipeline_mode = #tpu.pipeline_mode<synchronous>, transform_indices = @transform_2, window_bounds = array<i64: 8, 72>}, {pipeline_mode = #tpu.pipeline_mode<synchronous>, transform_indices = @transform_3, window_bounds = array<i64: 8, 1>}, {pipeline_mode = #tpu.pipeline_mode<synchronous>, transform_indices = @transform_4, window_bounds = array<i64: 32, 8>}, {pipeline_mode = #tpu.pipeline_mode<synchronous>, transform_indices = @transform_5, window_bounds = array<i64: 32, 1>}, {pipeline_mode = #tpu.pipeline_mode<synchronous>, transform_indices = @transform_6, window_bounds = array<i64: 9, 512>}, {transform_indices = @transform_7, window_bounds = array<i64: 32, 512>}]} {
    %c0 = arith.constant 0 : index
    %c0_0 = arith.constant 0 : index
    %0 = vector.load %arg1[%c0, %c0_0] : memref<5x512xf32, #tpu.memory_space<vmem>>, vector<5x512xf32>
    %c0_1 = arith.constant 0 : index
    %c0_2 = arith.constant 0 : index
    %1 = vector.load %arg2[%c0_1, %c0_2] : memref<40x5xf32, #tpu.memory_space<vmem>>, vector<40x5xf32>
    %cst = arith.constant dense<0.000000e+00> : vector<40x512xf32>
    %2 = tpu.matmul %1, %0, %cst {dimension_numbers = #tpu.dot_dimension_numbers<[1], [0], [0], [1], [0, 0, 1, 1], [], []>} : vector<40x5xf32>, vector<5x512xf32>, vector<40x512xf32> -> vector<40x512xf32>
    %3 = vector.extract_strided_slice %2 {offsets = [0, 0], sizes = [8, 512], strides = [1, 1]} : vector<40x512xf32> to vector<8x512xf32>
    %cst_3 = arith.constant 0.000000e+00 : f32
    %4 = vector.broadcast %cst_3 : f32 to vector<8x512xf32>
    %5 = arith.cmpf ogt, %3, %4 : vector<8x512xf32>
    %cst_4 = arith.constant 0.000000e+00 : f32
    %6 = vector.broadcast %cst_4 : f32 to vector<8x512xf32>
    %7 = arith.minimumf %3, %6 : vector<8x512xf32>
    %8 = math.exp %7 : vector<8x512xf32>
    %cst_5 = arith.constant 1.000000e+00 : f32
    %9 = vector.broadcast %cst_5 : f32 to vector<8x512xf32>
    %10 = arith.subf %8, %9 : vector<8x512xf32>
    %11 = arith.select %5, %3, %10 : vector<8x512xi1>, vector<8x512xf32>
    %12 = vector.extract_strided_slice %2 {offsets = [8, 0], sizes = [32, 512], strides = [1, 1]} : vector<40x512xf32> to vector<32x512xf32>
    %c0_6 = arith.constant 0 : index
    %c0_7 = arith.constant 0 : index
    %13 = vector.load %arg7[%c0_6, %c0_7] : memref<9x512xf32, #tpu.memory_space<vmem>>, vector<9x512xf32>
    %c17_i32 = arith.constant 17 : i32
    %14 = tpu.dynamic_rotate %11 by %c17_i32 dim 1 : vector<8x512xf32>, i32 -> vector<8x512xf32>
    %15 = vector.extract_strided_slice %13 {offsets = [0, 0], sizes = [1, 512], strides = [1, 1]} : vector<9x512xf32> to vector<1x512xf32>
    %16 = vector.broadcast %15 : vector<1x512xf32> to vector<8x512xf32>
    %17 = arith.mulf %14, %16 : vector<8x512xf32>
    %c16_i32 = arith.constant 16 : i32
    %18 = tpu.dynamic_rotate %11 by %c16_i32 dim 1 : vector<8x512xf32>, i32 -> vector<8x512xf32>
    %19 = vector.extract_strided_slice %13 {offsets = [1, 0], sizes = [1, 512], strides = [1, 1]} : vector<9x512xf32> to vector<1x512xf32>
    %20 = vector.broadcast %19 : vector<1x512xf32> to vector<8x512xf32>
    %21 = arith.mulf %18, %20 : vector<8x512xf32>
    %c15_i32 = arith.constant 15 : i32
    %22 = tpu.dynamic_rotate %11 by %c15_i32 dim 1 : vector<8x512xf32>, i32 -> vector<8x512xf32>
    %23 = vector.extract_strided_slice %13 {offsets = [2, 0], sizes = [1, 512], strides = [1, 1]} : vector<9x512xf32> to vector<1x512xf32>
    %24 = vector.broadcast %23 : vector<1x512xf32> to vector<8x512xf32>
    %25 = arith.mulf %22, %24 : vector<8x512xf32>
    %c1_i32 = arith.constant 1 : i32
    %26 = tpu.dynamic_rotate %11 by %c1_i32 dim 1 : vector<8x512xf32>, i32 -> vector<8x512xf32>
    %27 = vector.extract_strided_slice %13 {offsets = [3, 0], sizes = [1, 512], strides = [1, 1]} : vector<9x512xf32> to vector<1x512xf32>
    %28 = vector.broadcast %27 : vector<1x512xf32> to vector<8x512xf32>
    %29 = arith.mulf %26, %28 : vector<8x512xf32>
    %c511_i32 = arith.constant 511 : i32
    %30 = tpu.dynamic_rotate %11 by %c511_i32 dim 1 : vector<8x512xf32>, i32 -> vector<8x512xf32>
    %31 = vector.extract_strided_slice %13 {offsets = [5, 0], sizes = [1, 512], strides = [1, 1]} : vector<9x512xf32> to vector<1x512xf32>
    %32 = vector.broadcast %31 : vector<1x512xf32> to vector<8x512xf32>
    %33 = arith.mulf %30, %32 : vector<8x512xf32>
    %c497_i32 = arith.constant 497 : i32
    %34 = tpu.dynamic_rotate %11 by %c497_i32 dim 1 : vector<8x512xf32>, i32 -> vector<8x512xf32>
    %35 = vector.extract_strided_slice %13 {offsets = [6, 0], sizes = [1, 512], strides = [1, 1]} : vector<9x512xf32> to vector<1x512xf32>
    %36 = vector.broadcast %35 : vector<1x512xf32> to vector<8x512xf32>
    %37 = arith.mulf %34, %36 : vector<8x512xf32>
    %c496_i32 = arith.constant 496 : i32
    %38 = tpu.dynamic_rotate %11 by %c496_i32 dim 1 : vector<8x512xf32>, i32 -> vector<8x512xf32>
    %39 = vector.extract_strided_slice %13 {offsets = [7, 0], sizes = [1, 512], strides = [1, 1]} : vector<9x512xf32> to vector<1x512xf32>
    %40 = vector.broadcast %39 : vector<1x512xf32> to vector<8x512xf32>
    %41 = arith.mulf %38, %40 : vector<8x512xf32>
    %c495_i32 = arith.constant 495 : i32
    %42 = tpu.dynamic_rotate %11 by %c495_i32 dim 1 : vector<8x512xf32>, i32 -> vector<8x512xf32>
    %43 = vector.extract_strided_slice %13 {offsets = [8, 0], sizes = [1, 512], strides = [1, 1]} : vector<9x512xf32> to vector<1x512xf32>
    %44 = vector.broadcast %43 : vector<1x512xf32> to vector<8x512xf32>
    %45 = arith.mulf %42, %44 : vector<8x512xf32>
    %46 = tpu.concatenate %17, %21, %25, %29, %11, %33, %37, %41, %45 in 0 : vector<8x512xf32>, vector<8x512xf32>, vector<8x512xf32>, vector<8x512xf32>, vector<8x512xf32>, vector<8x512xf32>, vector<8x512xf32>, vector<8x512xf32>, vector<8x512xf32> -> vector<72x512xf32>
    %c0_8 = arith.constant 0 : index
    %c0_9 = arith.constant 0 : index
    %47 = vector.load %arg3[%c0_8, %c0_9] : memref<8x72xf32, #tpu.memory_space<vmem>>, vector<8x72xf32>
    %cst_10 = arith.constant dense<0.000000e+00> : vector<8x512xf32>
    %48 = tpu.matmul %47, %46, %cst_10 {dimension_numbers = #tpu.dot_dimension_numbers<[1], [0], [0], [1], [0, 0, 1, 1], [], []>} : vector<8x72xf32>, vector<72x512xf32>, vector<8x512xf32> -> vector<8x512xf32>
    %c0_11 = arith.constant 0 : index
    %c0_12 = arith.constant 0 : index
    %49 = vector.load %arg4[%c0_11, %c0_12] : memref<8x1xf32, #tpu.memory_space<vmem>>, vector<8x1xf32>
    %50 = vector.broadcast %49 : vector<8x1xf32> to vector<8x512xf32>
    %51 = arith.addf %48, %50 : vector<8x512xf32>
    %cst_13 = arith.constant 0.000000e+00 : f32
    %52 = vector.broadcast %cst_13 : f32 to vector<8x512xf32>
    %53 = arith.cmpf ogt, %51, %52 : vector<8x512xf32>
    %cst_14 = arith.constant 0.000000e+00 : f32
    %54 = vector.broadcast %cst_14 : f32 to vector<8x512xf32>
    %55 = arith.minimumf %51, %54 : vector<8x512xf32>
    %56 = math.exp %55 : vector<8x512xf32>
    %cst_15 = arith.constant 1.000000e+00 : f32
    %57 = vector.broadcast %cst_15 : f32 to vector<8x512xf32>
    %58 = arith.subf %56, %57 : vector<8x512xf32>
    %59 = arith.select %53, %51, %58 : vector<8x512xi1>, vector<8x512xf32>
    %c0_16 = arith.constant 0 : index
    %c0_17 = arith.constant 0 : index
    %60 = vector.load %arg5[%c0_16, %c0_17] : memref<32x8xf32, #tpu.memory_space<vmem>>, vector<32x8xf32>
    %cst_18 = arith.constant dense<0.000000e+00> : vector<32x512xf32>
    %61 = tpu.matmul %60, %59, %cst_18 {dimension_numbers = #tpu.dot_dimension_numbers<[1], [0], [0], [1], [0, 0, 1, 1], [], []>} : vector<32x8xf32>, vector<8x512xf32>, vector<32x512xf32> -> vector<32x512xf32>
    %c0_19 = arith.constant 0 : index
    %c0_20 = arith.constant 0 : index
    %62 = vector.load %arg6[%c0_19, %c0_20] : memref<32x1xf32, #tpu.memory_space<vmem>>, vector<32x1xf32>
    %63 = vector.broadcast %62 : vector<32x1xf32> to vector<32x512xf32>
    %64 = arith.addf %61, %63 : vector<32x512xf32>
    %65 = arith.addf %64, %12 : vector<32x512xf32>
    %cst_21 = arith.constant 0.000000e+00 : f32
    %66 = vector.broadcast %cst_21 : f32 to vector<32x512xf32>
    %67 = arith.cmpf ogt, %65, %66 : vector<32x512xf32>
    %cst_22 = arith.constant 0.000000e+00 : f32
    %68 = vector.broadcast %cst_22 : f32 to vector<32x512xf32>
    %69 = arith.minimumf %65, %68 : vector<32x512xf32>
    %70 = math.exp %69 : vector<32x512xf32>
    %cst_23 = arith.constant 1.000000e+00 : f32
    %71 = vector.broadcast %cst_23 : f32 to vector<32x512xf32>
    %72 = arith.subf %70, %71 : vector<32x512xf32>
    %73 = arith.select %67, %65, %72 : vector<32x512xi1>, vector<32x512xf32>
    %c0_24 = arith.constant 0 : index
    %c0_25 = arith.constant 0 : index
    %74 = vector.load %arg8[%c0_24, %c0_25] : memref<32x512xf32, #tpu.memory_space<vmem>>, vector<32x512xf32>
    tpu.vector_store %arg8[%c0_24, %c0_25], %73 {strides = array<i32>} : memref<32x512xf32, #tpu.memory_space<vmem>>, vector<32x512xf32>,
    return
  }
  func.func @transform_0(%arg0: i32) -> (i32, i32) {
    %c0_i32 = arith.constant 0 : i32
    %c0_i32_0 = arith.constant 0 : i32
    return %c0_i32, %arg0 : i32, i32
  }
  func.func @transform_1(%arg0: i32) -> (i32, i32) {
    %c0_i32 = arith.constant 0 : i32
    %c0_i32_0 = arith.constant 0 : i32
    %c0_i32_1 = arith.constant 0 : i32
    return %c0_i32, %c0_i32_0 : i32, i32
  }
  func.func @transform_2(%arg0: i32) -> (i32, i32) {
    %c0_i32 = arith.constant 0 : i32
    %c0_i32_0 = arith.constant 0 : i32
    %c0_i32_1 = arith.constant 0 : i32
    return %c0_i32, %c0_i32_0 : i32, i32
  }
  func.func @transform_3(%arg0: i32) -> (i32, i32) {
    %c0_i32 = arith.constant 0 : i32
    %c0_i32_0 = arith.constant 0 : i32
    %c0_i32_1 = arith.constant 0 : i32
    return %c0_i32, %c0_i32_0 : i32, i32
  }
  func.func @transform_4(%arg0: i32) -> (i32, i32) {
    %c0_i32 = arith.constant 0 : i32
    %c0_i32_0 = arith.constant 0 : i32
    %c0_i32_1 = arith.constant 0 : i32
    return %c0_i32, %c0_i32_0 : i32, i32
  }
  func.func @transform_5(%arg0: i32) -> (i32, i32) {
    %c0_i32 = arith.constant 0 : i32
    %c0_i32_0 = arith.constant 0 : i32
    %c0_i32_1 = arith.constant 0 : i32
    return %c0_i32, %c0_i32_0 : i32, i32
  }
  func.func @transform_6(%arg0: i32) -> (i32, i32) {
    %c0_i32 = arith.constant 0 : i32
    %c0_i32_0 = arith.constant 0 : i32
    %c0_i32_1 = arith.constant 0 : i32
    return %c0_i32, %c0_i32_0 : i32, i32
  }
  func.func @transform_7(%arg0: i32) -> (i32, i32) {
    %c0_i32 = arith.constant 0 : i32
    %c0_i32_0 = arith.constant 0 : i32
    return %c0_i32, %arg0 : i32, i32
  }
}

</mosaic_0001>

<bundles_post_ra>
// kernel: tpu_custom_call.1
= control target key start
LH: loop header
LB: loop body
LE: loop exit
PB: predicated region body
PF: predicated region fallthrough
CT: control target
= control target key end

     0   :  { %vm52_vm0 = vcmask 1044480   ;;  %vm36_vm1 = vcmask 39936   ;;  %s1494_s0 = inlined_call_operand.vmem [shape: f32[5,512], index: 0, kind: input, shape index: {}]   ;;  %s1495_s1 = inlined_call_operand.vmem [shape: f32[40,5], index: 1, kind: input, shape index: {}]   ;;  %s1496_s2 = inlined_call_operand.vmem [shape: f32[8,72], index: 2, kind: input, shape index: {}]   ;;  %s1497_s3 = inlined_call_operand.vmem [shape: f32[8,1], index: 3, kind: input, shape index: {}]   ;;  %s1498_s4 = inlined_call_operand.vmem [shape: f32[32,8], index: 4, kind: input, shape index: {}]   ;;  %s1499_s5 = inlined_call_operand.vmem [shape: f32[32,1], index: 5, kind: input, shape index: {}]   ;;  %s1500_s6 = inlined_call_operand.vmem [shape: f32[9,512], index: 6, kind: input, shape index: {}]   ;;  %s1501_s7 = inlined_call_operand.hbm [shape: f32[32,512], index: 7, kind: output, shape index: {}]  }
   0x1   :  { %v27_v0 = vld [vmem:[%s1494_s0] sm:$0x1f]  ;;  %v28_v1 = vld [vmem:[%s1494_s0 + $0x8] sm:$0x1f]  ;;  %v29_v3 = vld [vmem:[%s1494_s0 + $0x10] sm:$0x1f] }
   0x2   :  { %v31_v2 = vld [vmem:[%s1495_s1] sm:$0xff]  ;;  %813 = vmatpush.msk.msra.mxu0 %vm52_vm0, %v27_v0  ;;  %819 = vmatpush.msk.msra.mxu1 %vm52_vm0, %v28_v1  ;;  %v30_v4 = vld [vmem:[%s1494_s0 + $0x18] sm:$0x1f] }
   0x3   :  { %814 = vmatmul.msk.f32.vlgmr.msra.gmra.mxu0 %vm36_vm1, %v31_v2  ;;  %820 = vmatmul.msk.f32.vlgmr.msra.gmra.mxu1 %vm36_vm1, %v31_v2 }
   0x4   :  { %825 = vmatpush.msk.msra.mxu2 %vm52_vm0, %v29_v3  ;;  %831 = vmatpush.msk.msra.mxu3 %vm52_vm0, %v30_v4 }
   0x5   :  { %12 = vsyncpa [#allocation3], 0  ;;  %826 = vmatmul.msk.f32.vlgmr.msra.gmra.mxu2 %vm36_vm1, %v31_v2  ;;  %832 = vmatmul.msk.f32.vlgmr.msra.gmra.mxu3 %vm36_vm1, %v31_v2  ;;  %s974_s0 = smov 112   ;;  %s975_s11 = smov 111   ;;  %v32_v35 = vld [vmem:[%s1495_s1 + $0x8] sm:$0xff]  ;;  %v33_v39 = vld [vmem:[%s1495_s1 + $0x10] sm:$0xff]  ;;  %v233_v40 = vlaneseq }
   0x6   :  { %s976_s12 = smov 17   ;;  %s977_s13 = smov 16   ;;  %v1142_v45 = vld [vmem:[%s1500_s6 + $0x18] sm:$0xff]  ;;  %v35_v59 = vld [vmem:[%s1495_s1 + $0x20] sm:$0xff]  ;;  %vm402_vm14 = vcmask 588800   ;;  %vm538_vm0 = vcmask 64512  }
   0x7   :  { %s978_s14 = smov 113   ;;  %s979_s15 = smov 127   ;;  %v1137_v44 = vand.u32 127, %v233_v40  ;;  %v34_v46 = vld [vmem:[%s1495_s1 + $0x18] sm:$0xff]  ;;  %v369_v50 = vperm.slane %v1142_v45, 7  ;;  %v348_v55 = vperm.slane %v1142_v45, 6 }
   0x8   :  { %s980_s16 = smov 1   ;;  %s981_s17 = smov 15   ;;  %v896_v47 = vld [vmem:[%s1500_s6 + $0x38] ss:$0 sm:$0xff]  ;;  %v327_v58 = vperm.slane %v1142_v45, 5  ;;  %v1194_v2 = vld [vmem:[%s1500_s6] sm:$0xff] }
   0x9   :  { %vm382_vm6 = vcmp.lt.s32.totalorder %v1137_v44, 111  ;;  %vm361_vm7 = vcmp.lt.s32.totalorder %v1137_v44, 112  ;;  %vm340_vm8 = vcmp.lt.s32.totalorder %v1137_v44, 113  ;;  %vm319_vm9 = vcmp.lt.s32.totalorder %v1137_v44, 127  ;;  %v897_v3 = vld [vmem:[%s1500_s6 + $0x20] ss:$0 sm:$0xff] }
   0xa   :  { %vm298_vm10 = vcmp.lt.s32.totalorder %v1137_v44, 1  ;;  %vm256_vm11 = vcmp.lt.s32.totalorder %v1137_v44, 16  ;;  %vm277_vm12 = vcmp.lt.s32.totalorder %v1137_v44, 15  ;;  %vm235_vm13 = vcmp.lt.s32.totalorder %v1137_v44, 17 }
   0xb   :  { %815 = vmatmul.msk.f32.gmra.mxu0 %vm36_vm1, %v32_v35  ;;  %821 = vmatmul.msk.f32.gmra.mxu1 %vm36_vm1, %v32_v35 }
   0xd   :  { %827 = vmatmul.msk.f32.gmra.mxu2 %vm36_vm1, %v32_v35  ;;  %833 = vmatmul.msk.f32.gmra.mxu3 %vm36_vm1, %v32_v35 }
  0x13   :  { %816 = vmatmul.msk.f32.gmra.mxu0 %vm36_vm1, %v33_v39  ;;  %822 = vmatmul.msk.f32.gmra.mxu1 %vm36_vm1, %v33_v39 }
  0x15   :  { %828 = vmatmul.msk.f32.gmra.mxu2 %vm36_vm1, %v33_v39  ;;  %834 = vmatmul.msk.f32.gmra.mxu3 %vm36_vm1, %v33_v39 }
  0x1b   :  { %817 = vmatmul.msk.f32.gmra.mxu0 %vm36_vm1, %v34_v46  ;;  %823 = vmatmul.msk.f32.gmra.mxu1 %vm36_vm1, %v34_v46 }
  0x1d   :  { %829 = vmatmul.msk.f32.gmra.mxu2 %vm36_vm1, %v34_v46  ;;  %835 = vmatmul.msk.f32.gmra.mxu3 %vm36_vm1, %v34_v46 }
  0x23   :  { %818 = vmatmul.msk.f32.gmra.mxu0 %vm36_vm1, %v35_v59  ;;  %824 = vmatmul.msk.f32.gmra.mxu1 %vm36_vm1, %v35_v59 }
  0x25   :  { %830 = vmatmul.msk.f32.gmra.mxu2 %vm36_vm1, %v35_v59  ;;  %836 = vmatmul.msk.f32.gmra.mxu3 %vm36_vm1, %v35_v59  ;;  %v264_v59 = vperm.slane %v1142_v45, 1 }
  0x80   :  { %v82_v5 = vpop.f32.mrf.mxu0  ;;  %v114_v6 = vpop.f32.mrf.mxu1 }
  0x81   :  { %v197_v7 = vmin.f32 %v82_v5, 0.0  ;;  %v198_v8 = vmin.f32 %v114_v6, 0.0  ;;  %vm193_vm2 = vcmp.gt.f32.partialorder %v82_v5, 0.0  ;;  %vm194_vm3 = vcmp.gt.f32.partialorder %v114_v6, 0.0 }
  0x83   :  { %v201_v9 = vmul.f32 1.442695, %v197_v7  ;;  %v203_v10 = vmul.f32 1.442695, %v198_v8 }
  0x85   :  { %900 = vpow2.f32 %v201_v9 }
  0x86   :  { %902 = vpow2.f32 %v203_v10 }
  0x88   :  { %v146_v11 = vpop.f32.mrf.mxu2  ;;  %v178_v12 = vpop.f32.mrf.mxu3 }
  0x89   :  { %v199_v13 = vmin.f32 %v146_v11, 0.0  ;;  %v200_v14 = vmin.f32 %v178_v12, 0.0  ;;  %vm195_vm4 = vcmp.gt.f32.partialorder %v146_v11, 0.0  ;;  %vm196_vm5 = vcmp.gt.f32.partialorder %v178_v12, 0.0 }
  0x8b   :  { %v901_v15 = vpop.eup %900  ;;  %v205_v16 = vmul.f32 1.442695, %v199_v13  ;;  %v207_v21 = vmul.f32 1.442695, %v200_v14  ;;  %v1215_v14 = vld [vmem:[%s1500_s6 + $0x8] sm:$0xff] }
  0x8c   :  { %v903_v17 = vpop.eup %902  ;;  %v837_v18 = vadd.f32 -1.0, %v901_v15  ;;  %v1220_v15 = vld [vmem:[%s1500_s6 + $0x10] sm:$0xff]  ;;  %v346_v39 = vperm.slane %v1215_v14, 6 }
  0x8d   :  { %v838_v19 = vadd.f32 -1.0, %v903_v17  ;;  %904 = vpow2.f32 %v205_v16  ;;  %v898_v17 = vld [vmem:[%s1500_s6 + $0x28] ss:$0 sm:$0xff]  ;;  %v347_v40 = vperm.slane %v1220_v15, 6 }
  0x8e   :  { %v1045_v20 = vsel %vm193_vm2, %v82_v5, %v837_v18  ;;  %906 = vpow2.f32 %v207_v21  ;;  %v899_v18 = vld [vmem:[%s1500_s6 + $0x30] ss:$0 sm:$0xff] }
  0x8f   :  { %v1047_v22 = vsel %vm194_vm3, %v114_v6, %v838_v19  ;;  %353 = vrot.lane.b32.xlu1 %v1045_v20, %s974_s0  ;;  %374 = vrot.lane.b32.xlu0 %v1045_v20, %s975_s11  ;;  %v366_v6 = vperm.slane %v1194_v2, 7  ;;  %v306_v19 = vperm.slane %v1142_v45, 3 }
  0x90   :  { %227 = vrot.lane.b32.xlu2 %v1047_v22, %s976_s12 }
  0x93   :  { %v905_v23 = vpop.eup %904 }
  0x94   :  { %v839_v24 = vadd.f32 -1.0, %v905_v23  ;;  %v907_v26 = vpop.eup %906 }
  0x95   :  { %v840_v27 = vadd.f32 -1.0, %v907_v26  ;;  %v367_v26 = vperm.slane %v1215_v14, 7 }
  0x96   :  { %v1054_v25 = vsel %vm195_vm4, %v146_v11, %v839_v24  ;;  %v345_v11 = vperm.slane %v1194_v2, 6 }
  0x97   :  { %250 = vrot.lane.b32.xlu1 %v1047_v22, %s977_s13  ;;  %332 = vrot.lane.b32.xlu0 %v1045_v20, %s978_s14  ;;  %v1061_v28 = vsel %vm196_vm5, %v178_v12, %v840_v27  ;;  %v368_v27 = vperm.slane %v1220_v15, 7 }
  0x98   :  { %357 = vrot.lane.b32.xlu2 %v1054_v25, %s974_s0 }
  0x9f   :  { %355 = vrot.lane.b32.xlu1 %v1047_v22, %s974_s0  ;;  %311 = vrot.lane.b32.xlu0 %v1045_v20, %s979_s15 }
  0xa0   :  { %359 = vrot.lane.b32.xlu2 %v1061_v28, %s974_s0 }
  0xa7   :  { %380 = vrot.lane.b32.xlu1 %v1061_v28, %s975_s11  ;;  %292 = vrot.lane.b32.xlu0 %v1047_v22, %s980_s16 }
  0xa8   :  { %338 = vrot.lane.b32.xlu2 %v1061_v28, %s978_s14 }
  0xaf   :  { %336 = vrot.lane.b32.xlu1 %v1054_v25, %s978_s14  ;;  %271 = vrot.lane.b32.xlu0 %v1047_v22, %s981_s17 }
  0xb0   :  { %317 = vrot.lane.b32.xlu2 %v1061_v28, %s979_s15 }
  0xb7   :  { %315 = vrot.lane.b32.xlu1 %v1054_v25, %s979_s15  ;;  %376 = vrot.lane.b32.xlu0 %v1047_v22, %s975_s11 }
  0xb8   :  { %296 = vrot.lane.b32.xlu2 %v1061_v28, %s980_s16 }
  0xbf   :  { %294 = vrot.lane.b32.xlu1 %v1054_v25, %s980_s16  ;;  %378 = vrot.lane.b32.xlu0 %v1054_v25, %s975_s11  ;;  %s801_s11 = sshll.u32 %s1501_s7, 4  ;;  %s802_s11 = int_to_ptr.hbm [resolvable:$true] %s801_s11 }
  0xc0   :  { %275 = vrot.lane.b32.xlu2 %v1061_v28, %s981_s17 }
  0xc7   :  { %273 = vrot.lane.b32.xlu1 %v1054_v25, %s981_s17  ;;  %254 = vrot.lane.b32.xlu0 %v1061_v28, %s977_s13 }
  0xc8   :  { %252 = vrot.lane.b32.xlu2 %v1054_v25, %s977_s13 }
  0xcf   :  { %231 = vrot.lane.b32.xlu1 %v1061_v28, %s976_s12  ;;  %229 = vrot.lane.b32.xlu0 %v1054_v25, %s976_s12 }
  0xd0   :  { %334 = vrot.lane.b32.xlu2 %v1047_v22, %s978_s14 }
  0xd7   :  { %290 = vrot.lane.b32.xlu1 %v1045_v20, %s980_s16  ;;  %313 = vrot.lane.b32.xlu0 %v1047_v22, %s979_s15 }
  0xd8   :  { %269 = vrot.lane.b32.xlu2 %v1045_v20, %s981_s17 }
  0xdf   :  { %225 = vrot.lane.b32.xlu1 %v1045_v20, %s976_s12  ;;  %248 = vrot.lane.b32.xlu0 %v1045_v20, %s977_s13  ;;  %s984_s12 = smov 512   ;;  %s985_s13 = smov 32  }
  0xea   :  { %v1101_v29 = vpop.permute.xlu2 %227 }
  0xf2   :  { %v1103_v30 = vpop.permute.xlu2 %357 }
  0xfa   :  { %v1105_v31 = vpop.permute.xlu2 %359 }
  0xfb   :  { %v362_v21 = vsel %vm361_vm7, %v1103_v30, %v1105_v31 }
 0x101   :  { %v1107_v32 = vpop.permute.xlu1 %353  ;;  %v1109_v33 = vpop.permute.xlu0 %374 }
 0x102   :  { %v1111_v34 = vpop.permute.xlu2 %338  ;;  %v365_v51 = vsel %vm361_vm7, %v1105_v31, %v1107_v32 }
 0x103   :  { %v373_v57 = vmul.f32 %v369_v50, %v365_v51  ;;  %v326_v50 = vperm.slane %v1220_v15, 5 }
 0x109   :  { %v1120_v36 = vpop.permute.xlu1 %250  ;;  %v333_v37 = vpop.permute.xlu0 %332 }
 0x10a   :  { %v1122_v38 = vpop.permute.xlu2 %317  ;;  %v344_v56 = vsel %vm340_vm8, %v1111_v34, %v333_v37 }
 0x10b   :  { %v352_v61 = vmul.f32 %v348_v55, %v344_v56  ;;  %v396_v55 = vld [vmem:[%s1497_s3] sm:$0xff] }
 0x111   :  { %v1131_v41 = vpop.permute.xlu1 %355  ;;  %v1133_v42 = vpop.permute.xlu0 %311 }
 0x112   :  { %v1135_v43 = vpop.permute.xlu2 %296  ;;  %v323_v60 = vsel %vm319_vm9, %v1122_v38, %v1133_v42  ;;  %v364_v7 = vsel %vm361_vm7, %v1107_v32, %v1131_v41 }
 0x113   :  { %v331_v0 = vmul.f32 %v327_v58, %v323_v60  ;;  %v370_v13 = vmul.f32 %v366_v6, %v364_v7  ;;  %v305_v58 = vperm.slane %v1220_v15, 3 }
 0x119   :  { %v381_v48 = vpop.permute.xlu1 %380  ;;  %v1157_v49 = vpop.permute.xlu0 %292 }
 0x11a   :  { %v1164_v52 = vpop.permute.xlu2 %275  ;;  %v386_v53 = vsel %vm382_vm6, %v381_v48, %v1109_v33 }
 0x11b   :  { %v394_v54 = vmul.f32 %v896_v47, %v386_v53 }
 0x11d   :  { %473 = vmatpush.msrb.mxu3 %v394_v54  ;;  %v285_v54 = vperm.slane %v1142_v45, 2 }
 0x11f   :  { %474 = vmatpush.msrb.mxu3 %v373_v57 }
 0x121   :  { %v337_v62 = vpop.permute.xlu1 %336  ;;  %475 = vmatpush.msrb.mxu3 %v352_v61  ;;  %v1185_v63 = vpop.permute.xlu0 %271 }
 0x122   :  { %v1188_v1 = vpop.permute.xlu2 %252 }
 0x123   :  { %476 = vmatpush.msrb.mxu3 %v331_v0  ;;  %v982_v0 = vmov 0  }
 0x124   :  { %893 = vset.pattern.permute.xlu2 %v982_v0  ;;  %894 = vset.pattern.permute.xlu0 %v982_v0 }
 0x125   :  { %477 = vmatpush.msrb.mxu3 %v1061_v28  ;;  %v363_v28 = vsel %vm361_vm7, %v1131_v41, %v1103_v30  ;;  %v341_v30 = vsel %vm340_vm8, %v337_v62, %v1111_v34  ;;  %399 = vperm.xlu2 %893, %v396_v55  }
 0x126   :  { %v371_v47 = vmul.f32 %v367_v26, %v363_v28  ;;  %v351_v34 = vmul.f32 %v347_v40, %v341_v30  ;;  %895 = vset.pattern.permute.xlu1 %v982_v0 }
 0x129   :  { %v1199_v4 = vpop.permute.xlu1 %315  ;;  %v377_v5 = vpop.permute.xlu0 %376 }
 0x12a   :  { %v335_v8 = vpop.permute.xlu2 %334  ;;  %v385_v9 = vsel %vm382_vm6, %v1109_v33, %v377_v5  ;;  %v320_v51 = vsel %vm319_vm9, %v1199_v4, %v1122_v38 }
 0x12b   :  { %v391_v10 = vmul.f32 %v897_v3, %v385_v9  ;;  %v343_v12 = vsel %vm340_vm8, %v333_v37, %v335_v8  ;;  %v342_v41 = vsel %vm340_vm8, %v335_v8, %v337_v62  ;;  %v330_v38 = vmul.f32 %v326_v50, %v320_v51 }
 0x12c   :  { %v349_v16 = vmul.f32 %v345_v11, %v343_v12  ;;  %v350_v53 = vmul.f32 %v346_v39, %v342_v41  ;;  %v263_v9 = vperm.slane %v1220_v15, 1  ;;  %v242_v12 = vperm.slane %v1220_v15, 0 }
 0x12d   :  { %413 = vmatpush.msrb.mxu0 %v391_v10  ;;  %v258_v10 = vsel %vm256_vm11, %v1120_v36, %v1188_v1  ;;  %v304_v39 = vperm.slane %v1215_v14, 3 }
 0x12f   :  { %414 = vmatpush.msrb.mxu0 %v370_v13  ;;  %v243_v13 = vperm.slane %v1142_v45, 0  ;;  %v395_v45 = vld [vmem:[%s1496_s2] sm:$0xff] }
 0x131   :  { %v295_v23 = vpop.permute.xlu1 %294  ;;  %415 = vmatpush.msrb.mxu0 %v349_v16  ;;  %v379_v24 = vpop.permute.xlu0 %378 }
 0x132   :  { %v299_v32 = vsel %vm298_vm10, %v295_v23, %v1135_v43  ;;  %v383_v33 = vsel %vm382_vm6, %v379_v24, %v381_v48  ;;  %v384_v31 = vsel %vm382_vm6, %v377_v5, %v379_v24  ;;  %v372_v48 = vmul.f32 %v368_v27, %v362_v21 }
 0x133   :  { %v392_v35 = vmul.f32 %v898_v17, %v384_v31  ;;  %v393_v37 = vmul.f32 %v899_v18, %v383_v33  ;;  %v310_v46 = vmul.f32 %v306_v19, %v299_v32  ;;  %v300_v60 = vsel %vm298_vm10, %v1157_v49, %v295_v23  ;;  %v270_v33 = vpop.permute.xlu2 %269 }
 0x134   :  { %v284_v5 = vperm.slane %v1220_v15, 2  ;;  %v309_v7 = vmul.f32 %v305_v58, %v300_v60  ;;  %v267_v18 = vmul.f32 %v263_v9, %v258_v10  ;;  %v324_v23 = vperm.slane %v1194_v2, 5  ;;  %v1356_v58 = vpop.f32.mrf.mxu0 }
 0x135   :  { %433 = vmatpush.msrb.mxu1 %v392_v35  ;;  %453 = vmatpush.msrb.mxu2 %v393_v37  ;;  %v325_v24 = vperm.slane %v1215_v14, 5  ;;  %v303_v37 = vperm.slane %v1194_v2, 3  ;;  %v280_v41 = vsel %vm277_vm12, %v270_v33, %v1185_v63 }
 0x136   :  { %478 = vmatpush.msrb.mxu3 %v310_v46  ;;  %v281_v46 = vsel %vm277_vm12, %v1164_v52, %v270_v33 }
 0x137   :  { %434 = vmatpush.msrb.mxu1 %v371_v47  ;;  %454 = vmatpush.msrb.mxu2 %v372_v48  ;;  %v261_v47 = vperm.slane %v1194_v2, 1  ;;  %v262_v48 = vperm.slane %v1215_v14, 1 }
 0x139   :  { %v274_v56 = vpop.permute.xlu1 %273  ;;  %435 = vmatpush.msrb.mxu1 %v350_v53  ;;  %455 = vmatpush.msrb.mxu2 %v351_v34  ;;  %v1265_v57 = vpop.permute.xlu0 %254  ;;  %v240_v34 = vperm.slane %v1194_v2, 0 }
 0x13a   :  { %v278_v61 = vsel %vm277_vm12, %v274_v56, %v1164_v52  ;;  %v257_v62 = vsel %vm256_vm11, %v1188_v1, %v1265_v57  ;;  %v279_v6 = vsel %vm277_vm12, %v1185_v63, %v274_v56  ;;  %v241_v52 = vperm.slane %v1215_v14, 0 }
 0x13b   :  { %456 = vmatpush.msrb.mxu2 %v330_v38  ;;  %v289_v3 = vmul.f32 %v285_v54, %v278_v61  ;;  %v268_v8 = vmul.f32 %v264_v59, %v257_v62  ;;  %v288_v11 = vmul.f32 %v284_v5, %v279_v6  ;;  %v1358_v59 = vpop.f32.mrf.mxu1 }
 0x13c   :  { %v1364_v62 = vpop.f32.mrf.mxu0 }
 0x13d   :  { %457 = vmatpush.msrb.mxu2 %v1054_v25  ;;  %479 = vmatpush.msrb.mxu3 %v289_v3  ;;  %v516_v25 = vld [vmem:[%s1499_s5 + $0x10] sm:$0xff] }
 0x13e   :  { %530 = vperm.xlu2 %893, %v516_v25  }
 0x13f   :  { %458 = vmatpush.msrb.mxu2 %v309_v7  ;;  %480 = vmatpush.msrb.mxu3 %v268_v8 }
 0x141   :  { %v232_v16 = vpop.permute.xlu1 %231  ;;  %459 = vmatpush.msrb.mxu2 %v288_v11  ;;  %v230_v17 = vpop.permute.xlu0 %229 }
 0x142   :  { %v236_v1 = vsel %vm235_vm13, %v230_v17, %v232_v16  ;;  %v237_v19 = vsel %vm235_vm13, %v1101_v29, %v230_v17 }
 0x143   :  { %460 = vmatpush.msrb.mxu2 %v267_v18  ;;  %v246_v21 = vmul.f32 %v242_v12, %v237_v19  ;;  %v247_v15 = vmul.f32 %v243_v13, %v236_v1  ;;  %v1366_v0 = vpop.f32.mrf.mxu1  ;;  %v514_v18 = vld [vmem:[%s1499_s5] sm:$0xff] }
 0x144   :  { %v1372_v6 = vpop.f32.mrf.mxu0  ;;  %520 = vperm.xlu0 %894, %v514_v18  }
 0x145   :  { %461 = vmatpush.msrb.mxu2 %v246_v21  ;;  %481 = vmatpush.msrb.mxu3 %v247_v15  ;;  %v515_v21 = vld [vmem:[%s1499_s5 + $0x8] sm:$0xff] }
 0x146   :  { %843 = vmatmul.msk.f32.vlgmr.msrb.gmra.mxu2 %vm402_vm14, %v395_v45  ;;  %844 = vmatmul.msk.f32.vlgmr.msrb.gmra.mxu3 %vm402_vm14, %v395_v45 }
 0x147   :  { %525 = vperm.xlu1 %895, %v515_v21  }
 0x149   :  { %v291_v26 = vpop.permute.xlu1 %290  ;;  %v314_v27 = vpop.permute.xlu0 %313 }
 0x14a   :  { %v321_v28 = vsel %vm319_vm9, %v314_v27, %v1199_v4  ;;  %v322_v32 = vsel %vm319_vm9, %v1133_v42, %v314_v27  ;;  %v301_v40 = vsel %vm298_vm10, %v291_v26, %v1157_v49  ;;  %v302_v30 = vsel %vm298_vm10, %v1135_v43, %v291_v26 }
 0x14b   :  { %v328_v31 = vmul.f32 %v324_v23, %v322_v32  ;;  %v329_v35 = vmul.f32 %v325_v24, %v321_v28  ;;  %v282_v4 = vperm.slane %v1194_v2, 2  ;;  %v283_v42 = vperm.slane %v1215_v14, 2  ;;  %v1374_v7 = vpop.f32.mrf.mxu1 }
 0x14c   :  { %v307_v49 = vmul.f32 %v303_v37, %v302_v30  ;;  %v308_v43 = vmul.f32 %v304_v39, %v301_v40  ;;  %v1376_v13 = vpop.f32.mrf.mxu0 }
 0x14d   :  { %416 = vmatpush.msrb.mxu0 %v328_v31  ;;  %436 = vmatpush.msrb.mxu1 %v329_v35  ;;  %v286_v53 = vmul.f32 %v282_v4, %v281_v46  ;;  %v287_v63 = vmul.f32 %v283_v42, %v280_v41  ;;  %v510_v31 = vld [vmem:[%s1498_s4] sm:$0xff]  ;;  %v511_v4 = vld [vmem:[%s1498_s4 + $0x8] sm:$0xff]  ;;  %v517_v42 = vld [vmem:[%s1499_s5 + $0x18] sm:$0xff] }
 0x14f   :  { %417 = vmatpush.msrb.mxu0 %v1045_v20  ;;  %437 = vmatpush.msrb.mxu1 %v1047_v22 }
 0x150   :  { %535 = vperm.xlu1 %895, %v517_v42  }
 0x151   :  { %v226_v50 = vpop.permute.xlu1 %225  ;;  %418 = vmatpush.msrb.mxu0 %v307_v49  ;;  %438 = vmatpush.msrb.mxu1 %v308_v43  ;;  %v249_v51 = vpop.permute.xlu0 %248 }
 0x152   :  { %v238_v20 = vsel %vm235_vm13, %v226_v50, %v1101_v29  ;;  %v239_v22 = vsel %vm235_vm13, %v232_v16, %v226_v50  ;;  %v259_v54 = vsel %vm256_vm11, %v249_v51, %v1120_v36  ;;  %v260_v55 = vsel %vm256_vm11, %v1265_v57, %v249_v51  ;;  %v1348_v29 = vpop.f32.mrf.mxu2  ;;  %v1350_v36 = vpop.f32.mrf.mxu3  ;;  %v512_v50 = vld [vmem:[%s1498_s4 + $0x10] sm:$0xff]  ;;  %v513_v51 = vld [vmem:[%s1498_s4 + $0x18] sm:$0xff]  ;;  %s983_s4 = smov [#allocation2]  }
 0x153   :  { %419 = vmatpush.msrb.mxu0 %v286_v53  ;;  %439 = vmatpush.msrb.mxu1 %v287_v63  ;;  %v265_v2 = vmul.f32 %v261_v47, %v260_v55  ;;  %v266_v56 = vmul.f32 %v262_v48, %v259_v54  ;;  %v244_v14 = vmul.f32 %v240_v34, %v239_v22  ;;  %v1378_v25 = vpop.f32.mrf.mxu1  ;;  %s799_s9 = sshll.u32 %s983_s4, 4  ;;  %s800_s9 = int_to_ptr.vmem [resolvable:$true] %s799_s9 }
 0x154   :  { %v245_v38 = vmul.f32 %v241_v52, %v238_v20 }
 0x155   :  { %420 = vmatpush.msrb.mxu0 %v265_v2  ;;  %440 = vmatpush.msrb.mxu1 %v266_v56 }
 0x157   :  { %421 = vmatpush.msrb.mxu0 %v244_v14  ;;  %441 = vmatpush.msrb.mxu1 %v245_v38 }
 0x158   :  { %841 = vmatmul.msk.f32.vlgmr.msrb.gmra.mxu0 %vm402_vm14, %v395_v45  ;;  %842 = vmatmul.msk.f32.vlgmr.msrb.gmra.mxu1 %vm402_vm14, %v395_v45 }
 0x15a   :  { %v1352_v44 = vpop.f32.mrf.mxu2  ;;  %v1354_v57 = vpop.f32.mrf.mxu3 }
 0x162   :  { %v1360_v60 = vpop.f32.mrf.mxu2  ;;  %v1362_v61 = vpop.f32.mrf.mxu3 }
 0x16a   :  { %v1368_v3 = vpop.f32.mrf.mxu2  ;;  %v1370_v5 = vpop.f32.mrf.mxu3 }
 0x17f   :  { %v400_v8 = vpop.permute.xlu2 %399 }
 0x1b6   :  { %v521_v53 = vpop.permute.xlu0 %520 }
 0x1b9   :  { %v526_v14 = vpop.permute.xlu1 %525 }
 0x1c9   :  { %v463_v9 = vpop.f32.mrf.mxu2  ;;  %v483_v10 = vpop.f32.mrf.mxu3 }
 0x1ca   :  { %v464_v11 = vadd.f32 %v463_v9, %v400_v8  ;;  %v484_v12 = vadd.f32 %v483_v10, %v400_v8 }
 0x1cc   :  { %v492_v16 = vmin.f32 %v464_v11, 0.0  ;;  %v493_v17 = vmin.f32 %v484_v12, 0.0  ;;  %vm488_vm15 = vcmp.gt.f32.partialorder %v464_v11, 0.0  ;;  %vm489_vm1 = vcmp.gt.f32.partialorder %v484_v12, 0.0 }
 0x1ce   :  { %v498_v1 = vmul.f32 1.442695, %v492_v16  ;;  %v500_v19 = vmul.f32 1.442695, %v493_v17 }
 0x1d0   :  { %908 = vpow2.f32 %v498_v1 }
 0x1d1   :  { %910 = vpow2.f32 %v500_v19 }
 0x1d5   :  { %v423_v15 = vpop.f32.mrf.mxu0  ;;  %v443_v45 = vpop.f32.mrf.mxu1 }
 0x1d6   :  { %v909_v23 = vpop.eup %908  ;;  %v424_v24 = vadd.f32 %v423_v15, %v400_v8  ;;  %v444_v26 = vadd.f32 %v443_v45, %v400_v8 }
 0x1d7   :  { %v911_v27 = vpop.eup %910  ;;  %v847_v28 = vadd.f32 -1.0, %v909_v23 }
 0x1d8   :  { %v848_v32 = vadd.f32 -1.0, %v911_v27  ;;  %v490_v33 = vmin.f32 %v424_v24, 0.0  ;;  %v491_v35 = vmin.f32 %v444_v26, 0.0  ;;  %vm486_vm2 = vcmp.gt.f32.partialorder %v424_v24, 0.0 }
 0x1d9   :  { %v508_v37 = vsel %vm488_vm15, %v464_v11, %v847_v28  ;;  %vm487_vm3 = vcmp.gt.f32.partialorder %v444_v26, 0.0 }
 0x1da   :  { %v494_v39 = vmul.f32 1.442695, %v490_v33  ;;  %624 = vmatpush.msra.mxu2 %v508_v37  ;;  %v509_v40 = vsel %vm489_vm1, %v484_v12, %v848_v32  ;;  %v496_v30 = vmul.f32 1.442695, %v491_v35  ;;  %v531_v33 = vpop.permute.xlu2 %530 }
 0x1db   :  { %653 = vmatpush.msra.mxu3 %v509_v40  ;;  %857 = vmatmul.msk.f32.vlgmr.msra.gmra.mxu2 %vm538_vm0, %v510_v31 }
 0x1dc   :  { %912 = vpow2.f32 %v494_v39  ;;  %861 = vmatmul.msk.f32.vlgmr.msra.gmra.mxu3 %vm538_vm0, %v510_v31 }
 0x1dd   :  { %914 = vpow2.f32 %v496_v30 }
 0x1e2   :  { %v913_v41 = vpop.eup %912 }
 0x1e3   :  { %v915_v46 = vpop.eup %914  ;;  %v845_v49 = vadd.f32 -1.0, %v913_v41  ;;  %858 = vmatmul.msk.f32.gmra.mxu2 %vm538_vm0, %v511_v4 }
 0x1e4   :  { %v846_v43 = vadd.f32 -1.0, %v915_v46  ;;  %862 = vmatmul.msk.f32.gmra.mxu3 %vm538_vm0, %v511_v4 }
 0x1e5   :  { %v506_v47 = vsel %vm486_vm2, %v424_v24, %v845_v49 }
 0x1e6   :  { %566 = vmatpush.msra.mxu0 %v506_v47  ;;  %v507_v48 = vsel %vm487_vm3, %v444_v26, %v846_v43 }
 0x1e7   :  { %595 = vmatpush.msra.mxu1 %v507_v48  ;;  %849 = vmatmul.msk.f32.vlgmr.msra.gmra.mxu0 %vm538_vm0, %v510_v31 }
 0x1e8   :  { %853 = vmatmul.msk.f32.vlgmr.msra.gmra.mxu1 %vm538_vm0, %v510_v31 }
 0x1eb   :  { %859 = vmatmul.msk.f32.gmra.mxu2 %vm538_vm0, %v512_v50 }
 0x1ec   :  { %863 = vmatmul.msk.f32.gmra.mxu3 %vm538_vm0, %v512_v50 }
 0x1ef   :  { %850 = vmatmul.msk.f32.gmra.mxu0 %vm538_vm0, %v511_v4 }
 0x1f0   :  { %854 = vmatmul.msk.f32.gmra.mxu1 %vm538_vm0, %v511_v4 }
 0x1f3   :  { %860 = vmatmul.msk.f32.gmra.mxu2 %vm538_vm0, %v513_v51 }
 0x1f4   :  { %864 = vmatmul.msk.f32.gmra.mxu3 %vm538_vm0, %v513_v51 }
 0x1f7   :  { %851 = vmatmul.msk.f32.gmra.mxu0 %vm538_vm0, %v512_v50 }
 0x1f8   :  { %855 = vmatmul.msk.f32.gmra.mxu1 %vm538_vm0, %v512_v50 }
 0x1ff   :  { %852 = vmatmul.msk.f32.gmra.mxu0 %vm538_vm0, %v513_v51 }
 0x200   :  { %856 = vmatmul.msk.f32.gmra.mxu1 %vm538_vm0, %v513_v51 }
 0x25e   :  { %v626_v63 = vpop.f32.mrf.mxu2 }
 0x25f   :  { %v655_v34 = vpop.f32.mrf.mxu3  ;;  %v627_v52 = vadd.f32 %v626_v63, %v521_v53 }
 0x260   :  { %v656_v20 = vadd.f32 %v655_v34, %v521_v53 }
 0x261   :  { %v669_v22 = vadd.f32 %v627_v52, %v1348_v29 }
 0x262   :  { %v670_v54 = vadd.f32 %v656_v20, %v1350_v36 }
 0x263   :  { %v701_v55 = vmin.f32 %v669_v22, 0.0  ;;  %vm685_vm4 = vcmp.gt.f32.partialorder %v669_v22, 0.0 }
 0x264   :  { %v702_v2 = vmin.f32 %v670_v54, 0.0  ;;  %v568_v56 = vpop.f32.mrf.mxu0  ;;  %vm686_vm5 = vcmp.gt.f32.partialorder %v670_v54, 0.0 }
 0x265   :  { %v719_v38 = vmul.f32 1.442695, %v701_v55  ;;  %v569_v8 = vadd.f32 %v568_v56, %v521_v53  ;;  %v597_v9 = vpop.f32.mrf.mxu1 }
 0x266   :  { %v721_v10 = vmul.f32 1.442695, %v702_v2  ;;  %v598_v11 = vadd.f32 %v597_v9, %v521_v53  ;;  %v629_v12 = vpop.f32.mrf.mxu2 }
 0x267   :  { %916 = vpow2.f32 %v719_v38  ;;  %v1420_v16 = vadd.f32 %v569_v8, %v1356_v58  ;;  %v630_v17 = vadd.f32 %v629_v12, %v526_v14  ;;  %v658_v18 = vpop.f32.mrf.mxu3  ;;  %v536_v12 = vpop.permute.xlu1 %535 }
 0x268   :  { %918 = vpow2.f32 %v721_v10  ;;  %v1423_v29 = vadd.f32 %v598_v11, %v1358_v59  ;;  %v659_v36 = vadd.f32 %v658_v18, %v526_v14 }
 0x269   :  { %v699_v1 = vmin.f32 %v1420_v16, 0.0  ;;  %v1427_v19 = vadd.f32 %v630_v17, %v1352_v44  ;;  %vm683_vm6 = vcmp.gt.f32.partialorder %v1420_v16, 0.0 }
 0x26a   :  { %v700_v21 = vmin.f32 %v1423_v29, 0.0  ;;  %v1431_v15 = vadd.f32 %v659_v36, %v1354_v57  ;;  %vm684_vm7 = vcmp.gt.f32.partialorder %v1423_v29, 0.0 }
 0x26b   :  { %v715_v45 = vmul.f32 1.442695, %v699_v1  ;;  %v705_v58 = vmin.f32 %v1427_v19, 0.0  ;;  %vm689_vm8 = vcmp.gt.f32.partialorder %v1427_v19, 0.0 }
 0x26c   :  { %v717_v23 = vmul.f32 1.442695, %v700_v21  ;;  %v706_v24 = vmin.f32 %v1431_v15, 0.0  ;;  %v571_v59 = vpop.f32.mrf.mxu0  ;;  %vm690_vm9 = vcmp.gt.f32.partialorder %v1431_v15, 0.0 }
 0x26d   :  { %v917_v26 = vpop.eup %916  ;;  %920 = vpow2.f32 %v715_v45  ;;  %v727_v27 = vmul.f32 1.442695, %v705_v58  ;;  %v572_v28 = vadd.f32 %v571_v59, %v526_v14  ;;  %v600_v44 = vpop.f32.mrf.mxu1 }
 0x26e   :  { %v919_v32 = vpop.eup %918  ;;  %v867_v31 = vadd.f32 -1.0, %v917_v26  ;;  %922 = vpow2.f32 %v717_v23  ;;  %v729_v57 = vmul.f32 1.442695, %v706_v24  ;;  %v601_v35 = vadd.f32 %v600_v44, %v526_v14  ;;  %v632_v37 = vpop.f32.mrf.mxu2 }
 0x26f   :  { %v868_v39 = vadd.f32 -1.0, %v919_v32  ;;  %924 = vpow2.f32 %v727_v27  ;;  %v1436_v40 = vadd.f32 %v572_v28, %v1364_v62  ;;  %v633_v30 = vadd.f32 %v632_v37, %v531_v33  ;;  %v661_v4 = vpop.f32.mrf.mxu3 }
 0x270   :  { %v765_v42 = vsel %vm685_vm4, %v669_v22, %v867_v31  ;;  %926 = vpow2.f32 %v729_v57  ;;  %v1440_v41 = vadd.f32 %v601_v35, %v1366_v0  ;;  %v662_v46 = vadd.f32 %v661_v4, %v531_v33 }
 0x271   :  { %v766_v49 = vsel %vm686_vm5, %v670_v54, %v868_v39  ;;  %781 = vst [vmem:[#allocation2 + $0x10] sm:$0xff] %v765_v42  ;;  %v703_v43 = vmin.f32 %v1436_v40, 0.0  ;;  %v1445_v47 = vadd.f32 %v633_v30, %v1360_v60  ;;  %vm687_vm10 = vcmp.gt.f32.partialorder %v1436_v40, 0.0 }
 0x272   :  { %782 = vst [vmem:[#allocation2 + $0x18] sm:$0xff] %v766_v49  ;;  %v704_v62 = vmin.f32 %v1440_v41, 0.0  ;;  %v1450_v48 = vadd.f32 %v662_v46, %v1362_v61  ;;  %vm688_vm11 = vcmp.gt.f32.partialorder %v1440_v41, 0.0 }
 0x273   :  { %v921_v50 = vpop.eup %920  ;;  %v723_v0 = vmul.f32 1.442695, %v703_v43  ;;  %v709_v51 = vmin.f32 %v1445_v47, 0.0  ;;  %vm693_vm12 = vcmp.gt.f32.partialorder %v1445_v47, 0.0 }
 0x274   :  { %v923_v53 = vpop.eup %922  ;;  %v865_v63 = vadd.f32 -1.0, %v921_v50  ;;  %v725_v60 = vmul.f32 1.442695, %v704_v62  ;;  %v710_v34 = vmin.f32 %v1450_v48, 0.0  ;;  %v574_v52 = vpop.f32.mrf.mxu0  ;;  %vm694_vm13 = vcmp.gt.f32.partialorder %v1450_v48, 0.0 }
 0x275   :  { %v925_v20 = vpop.eup %924  ;;  %v866_v22 = vadd.f32 -1.0, %v923_v53  ;;  %928 = vpow2.f32 %v723_v0  ;;  %v735_v61 = vmul.f32 1.442695, %v709_v51  ;;  %v575_v54 = vadd.f32 %v574_v52, %v531_v33  ;;  %v603_v55 = vpop.f32.mrf.mxu1 }
 0x276   :  { %v927_v2 = vpop.eup %926  ;;  %v763_v56 = vsel %vm683_vm6, %v1420_v16, %v865_v63  ;;  %v871_v14 = vadd.f32 -1.0, %v925_v20  ;;  %930 = vpow2.f32 %v725_v60  ;;  %v737_v38 = vmul.f32 1.442695, %v710_v34  ;;  %v635_v8 = vpop.f32.mrf.mxu2 }
 0x277   :  { %779 = vst [vmem:[#allocation2] sm:$0xff] %v763_v56  ;;  %v764_v9 = vsel %vm684_vm7, %v1423_v29, %v866_v22  ;;  %v872_v10 = vadd.f32 -1.0, %v927_v2  ;;  %932 = vpow2.f32 %v735_v61  ;;  %v675_v11 = vadd.f32 %v575_v54, %v1372_v6  ;;  %v664_v17 = vpop.f32.mrf.mxu3 }
 0x278   :  { %780 = vst [vmem:[#allocation2 + $0x8] sm:$0xff] %v764_v9  ;;  %v769_v16 = vsel %vm689_vm8, %v1427_v19, %v871_v14  ;;  %934 = vpow2.f32 %v737_v38  ;;  %v604_v18 = vadd.f32 %v603_v55, %v531_v33  ;;  %v636_v36 = vadd.f32 %v635_v8, %v536_v12 }
 0x279   :  { %785 = vst [vmem:[#allocation2 + $0x30] sm:$0xff] %v769_v16  ;;  %v770_v1 = vsel %vm690_vm9, %v1431_v15, %v872_v10  ;;  %v707_v29 = vmin.f32 %v675_v11, 0.0  ;;  %v665_v21 = vadd.f32 %v664_v17, %v536_v12  ;;  %vm691_vm14 = vcmp.gt.f32.partialorder %v675_v11, 0.0 }
 0x27a   :  { %786 = vst [vmem:[#allocation2 + $0x38] sm:$0xff] %v770_v1  ;;  %v676_v6 = vadd.f32 %v604_v18, %v1374_v7  ;;  %v681_v45 = vadd.f32 %v636_v36, %v1368_v3 }
 0x27b   :  { %v929_v58 = vpop.eup %928  ;;  %v731_v23 = vmul.f32 1.442695, %v707_v29  ;;  %v682_v19 = vadd.f32 %v665_v21, %v1370_v5 }
 0x27c   :  { %v931_v24 = vpop.eup %930  ;;  %v869_v59 = vadd.f32 -1.0, %v929_v58  ;;  %v708_v15 = vmin.f32 %v676_v6, 0.0  ;;  %v577_v26 = vpop.f32.mrf.mxu0  ;;  %v713_v3 = vmin.f32 %v681_v45, 0.0  ;;  %vm692_vm15 = vcmp.gt.f32.partialorder %v676_v6, 0.0 }
 0x27d   :  { %v933_v27 = vpop.eup %932  ;;  %v870_v28 = vadd.f32 -1.0, %v931_v24  ;;  %936 = vpow2.f32 %v731_v23  ;;  %v606_v7 = vpop.f32.mrf.mxu1  ;;  %v714_v31 = vmin.f32 %v682_v19, 0.0  ;;  %v578_v39 = vadd.f32 %v577_v26, %v536_v12 }
 0x27e   :  { %v935_v44 = vpop.eup %934  ;;  %v767_v5 = vsel %vm687_vm10, %v1436_v40, %v869_v59  ;;  %v875_v32 = vadd.f32 -1.0, %v933_v27  ;;  %v733_v33 = vmul.f32 1.442695, %v708_v15  ;;  %v743_v37 = vmul.f32 1.442695, %v713_v3 }
 0x27f   :  { %783 = vst [vmem:[#allocation2 + $0x20] sm:$0xff] %v767_v5  ;;  %v768_v57 = vsel %vm688_vm11, %v1440_v41, %v870_v28  ;;  %v876_v35 = vadd.f32 -1.0, %v935_v44  ;;  %v745_v4 = vmul.f32 1.442695, %v714_v31  ;;  %v607_v42 = vadd.f32 %v606_v7, %v536_v12 }
 0x280   :  { %784 = vst [vmem:[#allocation2 + $0x28] sm:$0xff] %v768_v57  ;;  %v773_v30 = vsel %vm693_vm12, %v1445_v47, %v875_v32  ;;  %938 = vpow2.f32 %v733_v33  ;;  %v679_v46 = vadd.f32 %v578_v39, %v1376_v13  ;;  %vm697_vm0 = vcmp.gt.f32.partialorder %v681_v45, 0.0 }
 0x281   :  { %789 = vst [vmem:[#allocation2 + $0x50] sm:$0xff] %v773_v30  ;;  %v774_v40 = vsel %vm694_vm13, %v1450_v48, %v876_v35  ;;  %940 = vpow2.f32 %v743_v37  ;;  %v680_v41 = vadd.f32 %v607_v42, %v1378_v25  ;;  %vm698_vm1 = vcmp.gt.f32.partialorder %v682_v19, 0.0 }
 0x282   :  { %790 = vst [vmem:[#allocation2 + $0x58] sm:$0xff] %v774_v40  ;;  %942 = vpow2.f32 %v745_v4  ;;  %v711_v43 = vmin.f32 %v679_v46, 0.0  ;;  %vm695_vm2 = vcmp.gt.f32.partialorder %v679_v46, 0.0 }
 0x283   :  { %v937_v49 = vpop.eup %936  ;;  %v712_v50 = vmin.f32 %v680_v41, 0.0  ;;  %vm696_vm3 = vcmp.gt.f32.partialorder %v680_v41, 0.0 }
 0x284   :  { %v873_v62 = vadd.f32 -1.0, %v937_v49  ;;  %v739_v47 = vmul.f32 1.442695, %v711_v43 }
 0x285   :  { %v741_v53 = vmul.f32 1.442695, %v712_v50 }
 0x286   :  { %v939_v0 = vpop.eup %938  ;;  %v771_v51 = vsel %vm691_vm14, %v675_v11, %v873_v62  ;;  %944 = vpow2.f32 %v739_v47 }
 0x287   :  { %v941_v63 = vpop.eup %940  ;;  %787 = vst [vmem:[#allocation2 + $0x40] sm:$0xff] %v771_v51  ;;  %v874_v60 = vadd.f32 -1.0, %v939_v0  ;;  %946 = vpow2.f32 %v741_v53 }
 0x288   :  { %v943_v48 = vpop.eup %942  ;;  %v879_v13 = vadd.f32 -1.0, %v941_v63 }
 0x289   :  { %v772_v34 = vsel %vm692_vm15, %v676_v6, %v874_v60  ;;  %v880_v25 = vadd.f32 -1.0, %v943_v48 }
 0x28a   :  { %788 = vst [vmem:[#allocation2 + $0x48] sm:$0xff] %v772_v34  ;;  %v777_v52 = vsel %vm697_vm0, %v681_v45, %v879_v13 }
 0x28b   :  { %793 = vst [vmem:[#allocation2 + $0x70] sm:$0xff] %v777_v52  ;;  %v778_v20 = vsel %vm698_vm1, %v682_v19, %v880_v25 }
 0x28c   :  { %794 = vst [vmem:[#allocation2 + $0x78] sm:$0xff] %v778_v20  ;;  %v945_v22 = vpop.eup %944 }
 0x28d   :  { %v947_v61 = vpop.eup %946  ;;  %v877_v54 = vadd.f32 -1.0, %v945_v22 }
 0x28e   :  { %v878_v55 = vadd.f32 -1.0, %v947_v61 }
 0x28f   :  { %v775_v2 = vsel %vm695_vm2, %v679_v46, %v877_v54 }
 0x290   :  { %791 = vst [vmem:[#allocation2 + $0x60] sm:$0xff] %v775_v2  ;;  %v776_v56 = vsel %vm696_vm3, %v680_v41, %v878_v55 }
 0x291   :  { %792 = vst [vmem:[#allocation2 + $0x68] sm:$0xff] %v776_v56 }
 0x292   :  { %807 = dma.vmem_to_hbm [thread:$0]  %s800_s9, 2048, %s802_s11, [#allocation3], %s984_s12, %s984_s12, %s985_s13  }
 0x293   :  { %972 = dma.done.wait [#allocation3], 2048  }
 0x294   :  { %973 = vsyncadd [#allocation3], 4294965248 }
 0x295   :  { %812 = vsyncpa [#allocation3], 1 }

</bundles_post_ra>
